<compile_context>
chip_gen: v7x
topology: tpu7x:2x2x1
jax: 0.10.0
libtpu: 0.0.40
codegen_flags: <defaults>
</compile_context>

<pallas_src>
import jax
import jax.numpy as jnp
from jax.experimental import pallas as pl
from jax.experimental.pallas import tpu as pltpu

INPUT_DIM = 4
OUTPUT_DIM = 3


def _round_up(n, m):
    return ((n + m - 1) // m) * m


def linear_kernel(wt_ref, b_ref, xt_ref, ot_ref):
    """wt_ref: (INPUT_DIM, OUTPUT_DIM) VMEM f32  (weight.T — 12 values, grid-resident)
       b_ref : (OUTPUT_DIM,)           SMEM f32
       xt_ref: (INPUT_DIM, TB)         VMEM f32  (batch on the lane axis)
       ot_ref: (OUTPUT_DIM, TB)        VMEM f32  (batch on the lane axis)
    """
    x = xt_ref[...]                      # (4, TB), lane-dense
    wt = wt_ref[...]                     # (4, 3)
    for o in range(OUTPUT_DIM):          # fully unrolled at trace time
        w_col = wt[:, o:o + 1]           # (4, 1) weight column, broadcast along lanes
        # VPU: one (4,TB) multiply; XLU: 4-term cross-sublane reduce; VALU: bias add.
        row = jnp.sum(x * w_col, axis=0, keepdims=True) + b_ref[o]
        ot_ref[o:o + 1, :] = row.astype(ot_ref.dtype)   # direct lane-dense row store


def model_sr_forward_t(xt, weight, bias, *, batch_tile=256 * 1024):
    """Lane-dense core path: xt (INPUT_DIM, B) -> (OUTPUT_DIM, B) = W @ xt + b[:, None].

    batch_tile is rounded up to a multiple of 128; for B > batch_tile the batch is
    split into near-equal 128-aligned steps (so v7x's two TensorCores both get work).
    """
    B = xt.shape[1]
    bt = max(_round_up(int(batch_tile), 128), 128)
    if B > bt:
        nsteps = pl.cdiv(B, bt)
        tb = _round_up(pl.cdiv(B, nsteps), 128)      # balanced, 128-aligned, <= bt
    else:
        tb = _round_up(B, 128)                       # single step, minimal padding
    grid = pl.cdiv(B, tb)

    # Double-buffered x^T + y^T streaming blocks (+ headroom for weights/scratch).
    itemsize = jnp.dtype(xt.dtype).itemsize
    vmem_need = 2 * (INPUT_DIM + OUTPUT_DIM) * tb * itemsize
    vmem_limit = int(min(48 << 20, max(vmem_need + (8 << 20), 32 << 20)))

    wt = jnp.transpose(weight)                       # (INPUT_DIM, OUTPUT_DIM): 12 scalars

    return pl.pallas_call(
        linear_kernel,
        out_shape=jax.ShapeDtypeStruct((OUTPUT_DIM, B), xt.dtype),
        grid=(grid,),
        in_specs=[
            pl.BlockSpec((INPUT_DIM, OUTPUT_DIM), lambda i: (0, 0)),   # resident weights
            pl.BlockSpec(memory_space=pltpu.MemorySpace.SMEM),         # 3 bias scalars
            pl.BlockSpec((INPUT_DIM, tb), lambda i: (0, i)),           # x^T batch stream
        ],
        out_specs=pl.BlockSpec((OUTPUT_DIM, tb), lambda i: (0, i)),    # y^T batch stream
        compiler_params=pltpu.CompilerParams(
            dimension_semantics=("parallel",),        # split batch across TCs on v7x
            vmem_limit_bytes=vmem_limit,
        ),
    )(wt, bias, xt)


def model_sr_forward(x, weight, bias, *, batch_tile=256 * 1024):
    """PyTorch contract: x (B, INPUT_DIM) f32 -> (B, OUTPUT_DIM) == x @ weight.T + bias.

    The two transposes are layout plumbing only; callers that can hold activations
    in (features, batch) layout should use model_sr_forward_t directly (zero extra
    HBM passes).
    """
    yt = model_sr_forward_t(jnp.transpose(x), weight, bias, batch_tile=batch_tile)
    return jnp.transpose(yt)


def reference_forward(x, weight, bias):
    return x @ weight.T + bias


if __name__ == "__main__":
    key = jax.random.PRNGKey(0)
    k_x, k_w, k_b, k_x2 = jax.random.split(key, 4)

    # Deterministic params mimicking nn.Linear's uniform(-1/sqrt(in), 1/sqrt(in)) init.
    bound = 1.0 / (INPUT_DIM ** 0.5)
    weight = jax.random.uniform(k_w, (OUTPUT_DIM, INPUT_DIM),
                                minval=-bound, maxval=bound, dtype=jnp.float32)
    bias = jax.random.uniform(k_b, (OUTPUT_DIM,),
                              minval=-bound, maxval=bound, dtype=jnp.float32)

    # Module-spec input: x = torch.randn(1, input_dim) -> single partial block.
    x = jax.random.normal(k_x, (1, INPUT_DIM), dtype=jnp.float32)
    out = jax.block_until_ready(model_sr_forward(x, weight, bias))
    ref = reference_forward(x, weight, bias)
    assert out.shape == (1, OUTPUT_DIM)
    assert jnp.allclose(out, ref, atol=1e-5, rtol=1e-5)

    # Small multi-step + partial-last-block exercise (tiny batch_tile for testing only;
    # production default is 256K lanes per step).
    batch2 = 300
    x2 = jax.random.normal(k_x2, (batch2, INPUT_DIM), dtype=jnp.float32)
    out2 = jax.block_until_ready(model_sr_forward(x2, weight, bias, batch_tile=128))
    ref2 = reference_forward(x2, weight, bias)
    assert out2.shape == (batch2, OUTPUT_DIM)
    assert jnp.allclose(out2, ref2, atol=1e-5, rtol=1e-5)

    print("KERNEL_OK")
</pallas_src>

<mosaic_0001>
module attributes {stable_mosaic.version = 11 : i64} {
  func.func @linear_kernel(%arg0: i32, %arg1: memref<4x3xf32, #tpu.memory_space<vmem>>, %arg2: memref<3xf32, #tpu.memory_space<smem>>, %arg3: memref<4x128xf32, #tpu.memory_space<vmem>>, %arg4: memref<3x128xf32, #tpu.memory_space<vmem>>) attributes {dimension_semantics = [#tpu.dimension_semantics<parallel>], iteration_bounds = array<i64: 1>, scalar_prefetch = 0 : i64, scratch_operands = 0 : i64, tpu.core_type = #tpu.core_type<tc>, window_params = [{pipeline_mode = #tpu.pipeline_mode<synchronous>, transform_indices = @transform_0, window_bounds = array<i64: 4, 3>}, {transform_indices = @transform_1, window_bounds = array<i64: 3>}, {transform_indices = @transform_2, window_bounds = array<i64: 4, 128>}, {transform_indices = @transform_3, window_bounds = array<i64: 3, 128>}]} {
    %c0 = arith.constant 0 : index
    %c0_0 = arith.constant 0 : index
    %0 = vector.load %arg3[%c0, %c0_0] : memref<4x128xf32, #tpu.memory_space<vmem>>, vector<4x128xf32>
    %c0_1 = arith.constant 0 : index
    %c0_2 = arith.constant 0 : index
    %1 = vector.load %arg1[%c0_1, %c0_2] : memref<4x3xf32, #tpu.memory_space<vmem>>, vector<4x3xf32>
    %2 = vector.extract_strided_slice %1 {offsets = [0, 0], sizes = [4, 1], strides = [1, 1]} : vector<4x3xf32> to vector<4x1xf32>
    %3 = vector.broadcast %2 : vector<4x1xf32> to vector<4x128xf32>
    %4 = arith.mulf %0, %3 : vector<4x128xf32>
    %cst = arith.constant dense<0.000000e+00> : vector<128xf32>
    %5 = vector.multi_reduction <add>, %4, %cst [0] : vector<4x128xf32> to vector<128xf32>
    %6 = vector.shape_cast %5 : vector<128xf32> to vector<1x128xf32>
    %c0_3 = arith.constant 0 : index
    %7 = memref.load %arg2[%c0_3] : memref<3xf32, #tpu.memory_space<smem>>
    %8 = vector.broadcast %7 : f32 to vector<1x128xf32>
    %9 = arith.addf %6, %8 : vector<1x128xf32>
    %c0_4 = arith.constant 0 : index
    %c0_5 = arith.constant 0 : index
    %10 = vector.load %arg4[%c0_4, %c0_5] : memref<3x128xf32, #tpu.memory_space<vmem>>, vector<1x128xf32>
    tpu.vector_store %arg4[%c0_4, %c0_5], %9 {strides = array<i32>} : memref<3x128xf32, #tpu.memory_space<vmem>>, vector<1x128xf32>,
    %11 = vector.extract_strided_slice %1 {offsets = [0, 1], sizes = [4, 1], strides = [1, 1]} : vector<4x3xf32> to vector<4x1xf32>
    %12 = vector.broadcast %11 : vector<4x1xf32> to vector<4x128xf32>
    %13 = arith.mulf %0, %12 : vector<4x128xf32>
    %cst_6 = arith.constant dense<0.000000e+00> : vector<128xf32>
    %14 = vector.multi_reduction <add>, %13, %cst_6 [0] : vector<4x128xf32> to vector<128xf32>
    %15 = vector.shape_cast %14 : vector<128xf32> to vector<1x128xf32>
    %c1 = arith.constant 1 : index
    %16 = memref.load %arg2[%c1] : memref<3xf32, #tpu.memory_space<smem>>
    %17 = vector.broadcast %16 : f32 to vector<1x128xf32>
    %18 = arith.addf %15, %17 : vector<1x128xf32>
    %c1_7 = arith.constant 1 : index
    %c0_8 = arith.constant 0 : index
    %19 = vector.load %arg4[%c1_7, %c0_8] : memref<3x128xf32, #tpu.memory_space<vmem>>, vector<1x128xf32>
    tpu.vector_store %arg4[%c1_7, %c0_8], %18 {strides = array<i32>} : memref<3x128xf32, #tpu.memory_space<vmem>>, vector<1x128xf32>,
    %20 = vector.extract_strided_slice %1 {offsets = [0, 2], sizes = [4, 1], strides = [1, 1]} : vector<4x3xf32> to vector<4x1xf32>
    %21 = vector.broadcast %20 : vector<4x1xf32> to vector<4x128xf32>
    %22 = arith.mulf %0, %21 : vector<4x128xf32>
    %cst_9 = arith.constant dense<0.000000e+00> : vector<128xf32>
    %23 = vector.multi_reduction <add>, %22, %cst_9 [0] : vector<4x128xf32> to vector<128xf32>
    %24 = vector.shape_cast %23 : vector<128xf32> to vector<1x128xf32>
    %c2 = arith.constant 2 : index
    %25 = memref.load %arg2[%c2] : memref<3xf32, #tpu.memory_space<smem>>
    %26 = vector.broadcast %25 : f32 to vector<1x128xf32>
    %27 = arith.addf %24, %26 : vector<1x128xf32>
    %c2_10 = arith.constant 2 : index
    %c0_11 = arith.constant 0 : index
    %28 = vector.load %arg4[%c2_10, %c0_11] : memref<3x128xf32, #tpu.memory_space<vmem>>, vector<1x128xf32>
    tpu.vector_store %arg4[%c2_10, %c0_11], %27 {strides = array<i32>} : memref<3x128xf32, #tpu.memory_space<vmem>>, vector<1x128xf32>,
    return
  }
  func.func @transform_0(%arg0: i32) -> (i32, i32) {
    %c0_i32 = arith.constant 0 : i32
    %c0_i32_0 = arith.constant 0 : i32
    %c0_i32_1 = arith.constant 0 : i32
    return %c0_i32, %c0_i32_0 : i32, i32
  }
  func.func @transform_1(%arg0: i32) -> i32 {
    %c0_i32 = arith.constant 0 : i32
    %c0_i32_0 = arith.constant 0 : i32
    return %c0_i32 : i32
  }
  func.func @transform_2(%arg0: i32) -> (i32, i32) {
    %c0_i32 = arith.constant 0 : i32
    %c0_i32_0 = arith.constant 0 : i32
    return %c0_i32, %arg0 : i32, i32
  }
  func.func @transform_3(%arg0: i32) -> (i32, i32) {
    %c0_i32 = arith.constant 0 : i32
    %c0_i32_0 = arith.constant 0 : i32
    return %c0_i32, %arg0 : i32, i32
  }
}

</mosaic_0001>

<bundles_post_ra>
// kernel: tpu_custom_call.1
= control target key start
LH: loop header
LB: loop body
LE: loop exit
PB: predicated region body
PF: predicated region fallthrough
CT: control target
= control target key end

     0   :  { %8 = vsyncpa [#allocation3], 0  ;;  %s153_s0 = inlined_call_operand.vmem [shape: f32[4,3], index: 0, kind: input, shape index: {}]   ;;  %s154_s1 = inlined_call_operand.vmem [shape: f32[3], index: 1, kind: input, shape index: {}]   ;;  %s155_s2 = inlined_call_operand.vmem [shape: f32[4,1], index: 2, kind: input, shape index: {}]   ;;  %s156_s3 = inlined_call_operand.vmem [shape: f32[3,1], index: 3, kind: output, shape index: {}]  }
   0x1   :  { %s17_s14 = sshll.u32 %s154_s1, 4  ;;  %s18_s14 = int_to_ptr.vmem [resolvable:$true] %s17_s14 }
   0x2   :  { %s94_s15 = scalar_lea.vmem %s18_s14, 16  ;;  %p99_p1 = scmp.lt.s32.totalorder %s18_s14, %s18_s14 }
   0x3   :  { %p95_p0 = scmp.ne.s32.totalorder %s18_s14, %s94_s15  ;;  %p100_p2 = scmp.lt.s32.totalorder %s94_s15, %s94_s15 }
   0x5   :  { %p101_p3 = por %p100_p2, %p99_p1 }
   0x7   :  { %p102_p4 = pnand %p101_p3, %p95_p0 }
   0x9   :  { %105 = shalt.err (!%p102_p4)
}
   0xa   :  { %s108_s16 = smov [#allocation2]  }
   0xb   :  { %20 = dma.vmem_to_smem %s18_s14, 16, %s108_s16, [#allocation3]  }
   0xc   :  { %106 = dma.done.wait [#allocation3], 16  }
   0xd   :  { %107 = vsyncadd [#allocation3], 4294967280 }
   0xe   :  { %26 = sfence }
   0xf   :  { %v28_v0 = vld [vmem:[%s153_s0] sm:$0xf]  ;;  %v109_v1 = vmov 2   ;;  %v110_v2 = vmov 0   ;;  %v111_v3 = vmov 1   ;;  %vm35_vm0 = vcmask 1043456  }
  0x10   :  { %92 = vset.pattern.permute.xlu1 %v109_v1  ;;  %90 = vset.pattern.permute.xlu0 %v110_v2  ;;  %v27_v4 = vld [vmem:[%s155_s2] sm:$0xf]  ;;  %s85_s0 = sld [smem:[#allocation2 + $0x2]]  ;;  %s43_s20 = sld [smem:[#allocation2]] }
  0x11   :  { %64 = vperm.xlu1 %92, %v28_v0   ;;  %31 = vperm.xlu0 %90, %v28_v0   ;;  %s84_s2 = sld [smem:[#allocation2 + $0x1]] }
  0x15   :  { %91 = vset.pattern.permute.xlu0 %v111_v3 }
  0x16   :  { %48 = vperm.xlu0 %91, %v28_v0   ;;  %v76_v26 = vstv %s85_s0  ;;  %v44_v27 = vstv %s43_s20 }
  0x17   :  { %v60_v35 = vstv %s84_s2 }
  0x1a   :  { %93 = vset.pattern.permute.xlu0 %v109_v1 }
  0x90   :  { %v65_v5 = vpop.permute.xlu1 %64  ;;  %v32_v6 = vpop.permute.xlu0 %31 }
  0x91   :  { %v67_v7 = vmul.f32 %v65_v5, %v27_v4  ;;  %v34_v8 = vmul.f32 %v32_v6, %v27_v4 }
  0x93   :  { %v68_v9 = vsel %vm35_vm0, %v67_v7, 0.0  ;;  %v36_v10 = vsel %vm35_vm0, %v34_v8, 0.0 }
  0x94   :  { %v69_v11 = vrot.slane %v68_v9, 4  ;;  %v37_v12 = vrot.slane %v36_v10, 4 }
  0x95   :  { %v49_v13 = vpop.permute.xlu0 %48 }
  0x96   :  { %v70_v14 = vadd.f32 %v69_v11, %v68_v9  ;;  %v38_v15 = vadd.f32 %v37_v12, %v36_v10  ;;  %v51_v16 = vmul.f32 %v49_v13, %v27_v4 }
  0x98   :  { %v71_v17 = vrot.slane %v70_v14, 2  ;;  %v39_v18 = vrot.slane %v38_v15, 2  ;;  %v52_v19 = vsel %vm35_vm0, %v51_v16, 0.0 }
  0x99   :  { %v53_v20 = vrot.slane %v52_v19, 4 }
  0x9a   :  { %v72_v21 = vadd.f32 %v71_v17, %v70_v14  ;;  %v40_v22 = vadd.f32 %v39_v18, %v38_v15 }
  0x9b   :  { %v54_v23 = vadd.f32 %v53_v20, %v52_v19 }
  0x9c   :  { %v73_v24 = vrot.slane %v72_v21, 1  ;;  %v41_v25 = vrot.slane %v40_v22, 1 }
  0x9d   :  { %v55_v28 = vrot.slane %v54_v23, 2 }
  0x9e   :  { %v74_v29 = vadd.f32 %v73_v24, %v72_v21  ;;  %v42_v30 = vadd.f32 %v41_v25, %v40_v22 }
  0x9f   :  { %v56_v31 = vadd.f32 %v55_v28, %v54_v23 }
  0xa0   :  { %v77_v32 = vadd.f32 %v76_v26, %v74_v29  ;;  %v45_v33 = vadd.f32 %v44_v27, %v42_v30 }
  0xa1   :  { %v57_v34 = vrot.slane %v56_v31, 1 }
  0xa2   :  { %78 = vst [vmem:[%s156_s3 + $0x2] sm:$0x1] %v77_v32  ;;  %46 = vst [vmem:[%s156_s3] sm:$0x1] %v45_v33 }
  0xa3   :  { %v58_v36 = vadd.f32 %v57_v34, %v56_v31 }
  0xa5   :  { %v61_v37 = vadd.f32 %v60_v35, %v58_v36 }
  0xa7   :  { %62 = vst [vmem:[%s156_s3 + $0x1] sm:$0x1] %v61_v37 }
  0xa8   :  { %83 = vsyncpa [#allocation3], 1 }

</bundles_post_ra>
